<compile_context>
chip_gen: v7x
topology: tpu7x:2x2x1
jax: 0.10.0
libtpu: 0.0.40
codegen_flags: <defaults>
</compile_context>

<pallas_src>
import jax
import jax.numpy as jnp
from jax.experimental import pallas as pl
from jax.experimental.pallas import tpu as pltpu

IN_DIM = 113
HID_DIM = 8
MAX_TB = 8192            # 8192 rows * 128 lanes * 4 B = 4 MiB per f32 activation tile
VMEM_LIMIT = 48 << 20    # see VMEM budget above; <= physical on v5e/v6e/v7x


def _round_up(n, m):
    return (n + m - 1) // m * m


def _choose_tb(B):
    """Rows per batch tile: multiple of 8, capped at MAX_TB.

    For large batches that would otherwise fit in a single tile, split into two
    tiles so v7x's second TensorCore gets work (no effect on v5e/v6e).
    """
    full = _round_up(max(B, 1), 8)
    if full > MAX_TB:
        return MAX_TB                       # naturally >= 2 grid tiles
    if B >= 2048:
        return _round_up((B + 1) // 2, 8)   # exactly 2 grid tiles
    return full                             # tiny batch: single tile


def encoder_kernel(x_ref, w1_ref, b1_ref, w2_ref, b2_ref, o_ref):
    # Layer 1: (TB, 113) @ (113, 8) + (1, 8).  The unaligned K=113 contraction is
    # handled by Mosaic with masking; no HBM-side padding of x is needed.
    h = jnp.dot(x_ref[...], w1_ref[...], preferred_element_type=jnp.float32)
    h = h + b1_ref[...]
    # LeakyReLU(0.2) (PyTorch semantics; ties at 0 give 0 either way).
    h = jnp.where(h > 0, h, 0.2 * h)
    # Layer 2: (TB, 8) @ (8, 113) + (1, 113)
    out = jnp.dot(h, w2_ref[...], preferred_element_type=jnp.float32)
    o_ref[...] = (out + b2_ref[...]).astype(o_ref.dtype)


@jax.jit
def encoder_forward(x, w1, b1, w2, b2):
    """x: (B, 113) f32 -> (B, 113) f32. w1:(113,8), b1:(8,), w2:(8,113), b2:(113,)."""
    B = x.shape[0]
    TB = _choose_tb(B)
    n_tiles = pl.cdiv(B, TB)

    x = x.astype(jnp.float32)
    w1 = w1.astype(jnp.float32)
    b1_2d = b1.reshape(1, HID_DIM).astype(jnp.float32)
    w2 = w2.astype(jnp.float32)
    b2_2d = b2.reshape(1, IN_DIM).astype(jnp.float32)

    weight_bytes = 4 * (w1.size + b1_2d.size + w2.size + b2_2d.size)
    cost = pl.CostEstimate(
        flops=2 * B * (IN_DIM * HID_DIM + HID_DIM * IN_DIM),
        transcendentals=0,
        bytes_accessed=2 * B * IN_DIM * 4 + weight_bytes,
    )

    return pl.pallas_call(
        encoder_kernel,
        out_shape=jax.ShapeDtypeStruct((B, IN_DIM), jnp.float32),
        grid=(n_tiles,),
        in_specs=[
            pl.BlockSpec((TB, IN_DIM), lambda i: (i, 0)),        # x: streamed over batch
            pl.BlockSpec((IN_DIM, HID_DIM), lambda i: (0, 0)),   # w1: VMEM-resident
            pl.BlockSpec((1, HID_DIM), lambda i: (0, 0)),        # b1: VMEM-resident
            pl.BlockSpec((HID_DIM, IN_DIM), lambda i: (0, 0)),   # w2: VMEM-resident
            pl.BlockSpec((1, IN_DIM), lambda i: (0, 0)),         # b2: VMEM-resident
        ],
        out_specs=pl.BlockSpec((TB, IN_DIM), lambda i: (i, 0)),
        compiler_params=pltpu.CompilerParams(
            dimension_semantics=("parallel",),   # v7x: 2 TCs split the batch grid
            vmem_limit_bytes=VMEM_LIMIT,
        ),
        cost_estimate=cost,
    )(x, w1, b1_2d, w2, b2_2d)


def init_params(key):
    """PyTorch-style nn.Linear init (uniform +-1/sqrt(fan_in)); weights stored as
    (in, out) so the kernel computes x @ W + b."""
    k1, k2, k3, k4 = jax.random.split(key, 4)
    bound1 = 1.0 / jnp.sqrt(IN_DIM)
    bound2 = 1.0 / jnp.sqrt(HID_DIM)
    w1 = jax.random.uniform(k1, (IN_DIM, HID_DIM), jnp.float32, -bound1, bound1)
    b1 = jax.random.uniform(k2, (HID_DIM,), jnp.float32, -bound1, bound1)
    w2 = jax.random.uniform(k3, (HID_DIM, IN_DIM), jnp.float32, -bound2, bound2)
    b2 = jax.random.uniform(k4, (IN_DIM,), jnp.float32, -bound2, bound2)
    return w1, b1, w2, b2


def encoder_ref(x, w1, b1, w2, b2):
    h = x @ w1 + b1
    h = jnp.where(h > 0, h, 0.2 * h)
    return h @ w2 + b2


if __name__ == "__main__":
    key = jax.random.PRNGKey(0)
    kx, kp = jax.random.split(key)

    w1, b1, w2, b2 = init_params(kp)

    # Small mini-batch of Adult rows.
    B = 8
    x = jax.random.normal(kx, (B, IN_DIM), jnp.float32)
    out = jax.block_until_ready(encoder_forward(x, w1, b1, w2, b2))
    ref = encoder_ref(x, w1, b1, w2, b2)
    assert out.shape == (B, IN_DIM)
    assert jnp.allclose(out, ref, atol=1e-5, rtol=1e-5)

    # Ragged batch: exercises the clipped (partial) boundary-block path.
    B2 = 21
    x2 = jax.random.normal(jax.random.PRNGKey(1), (B2, IN_DIM), jnp.float32)
    out2 = jax.block_until_ready(encoder_forward(x2, w1, b1, w2, b2))
    ref2 = encoder_ref(x2, w1, b1, w2, b2)
    assert out2.shape == (B2, IN_DIM)
    assert jnp.allclose(out2, ref2, atol=1e-5, rtol=1e-5)

    print("KERNEL_OK")
</pallas_src>

<mosaic_0001>
module attributes {stable_mosaic.version = 11 : i64} {
  func.func @encoder_kernel(%arg0: i32, %arg1: memref<8x113xf32, #tpu.memory_space<vmem>>, %arg2: memref<113x8xf32, #tpu.memory_space<vmem>>, %arg3: memref<1x8xf32, #tpu.memory_space<vmem>>, %arg4: memref<8x113xf32, #tpu.memory_space<vmem>>, %arg5: memref<1x113xf32, #tpu.memory_space<vmem>>, %arg6: memref<8x113xf32, #tpu.memory_space<vmem>>) attributes {dimension_semantics = [#tpu.dimension_semantics<parallel>], iteration_bounds = array<i64: 1>, scalar_prefetch = 0 : i64, scratch_operands = 0 : i64, tpu.core_type = #tpu.core_type<tc>, window_params = [{transform_indices = @transform_0, window_bounds = array<i64: 8, 113>}, {pipeline_mode = #tpu.pipeline_mode<synchronous>, transform_indices = @transform_1, window_bounds = array<i64: 113, 8>}, {pipeline_mode = #tpu.pipeline_mode<synchronous>, transform_indices = @transform_2, window_bounds = array<i64: 1, 8>}, {pipeline_mode = #tpu.pipeline_mode<synchronous>, transform_indices = @transform_3, window_bounds = array<i64: 8, 113>}, {pipeline_mode = #tpu.pipeline_mode<synchronous>, transform_indices = @transform_4, window_bounds = array<i64: 1, 113>}, {transform_indices = @transform_5, window_bounds = array<i64: 8, 113>}]} {
    %c0 = arith.constant 0 : index
    %c0_0 = arith.constant 0 : index
    %0 = vector.load %arg1[%c0, %c0_0] : memref<8x113xf32, #tpu.memory_space<vmem>>, vector<8x113xf32>
    %c0_1 = arith.constant 0 : index
    %c0_2 = arith.constant 0 : index
    %1 = vector.load %arg2[%c0_1, %c0_2] : memref<113x8xf32, #tpu.memory_space<vmem>>, vector<113x8xf32>
    %cst = arith.constant dense<0.000000e+00> : vector<8x8xf32>
    %2 = tpu.matmul %0, %1, %cst {dimension_numbers = #tpu.dot_dimension_numbers<[1], [0], [0], [1], [0, 0, 1, 1], [], []>} : vector<8x113xf32>, vector<113x8xf32>, vector<8x8xf32> -> vector<8x8xf32>
    %c0_3 = arith.constant 0 : index
    %c0_4 = arith.constant 0 : index
    %3 = vector.load %arg3[%c0_3, %c0_4] : memref<1x8xf32, #tpu.memory_space<vmem>>, vector<1x8xf32>
    %4 = vector.broadcast %3 : vector<1x8xf32> to vector<8x8xf32>
    %5 = arith.addf %2, %4 : vector<8x8xf32>
    %cst_5 = arith.constant 0.000000e+00 : f32
    %6 = vector.broadcast %cst_5 : f32 to vector<8x8xf32>
    %7 = arith.cmpf ogt, %5, %6 : vector<8x8xf32>
    %cst_6 = arith.constant 2.000000e-01 : f32
    %8 = vector.broadcast %cst_6 : f32 to vector<8x8xf32>
    %9 = arith.mulf %8, %5 : vector<8x8xf32>
    %10 = arith.select %7, %5, %9 : vector<8x8xi1>, vector<8x8xf32>
    %c0_7 = arith.constant 0 : index
    %c0_8 = arith.constant 0 : index
    %11 = vector.load %arg4[%c0_7, %c0_8] : memref<8x113xf32, #tpu.memory_space<vmem>>, vector<8x113xf32>
    %cst_9 = arith.constant dense<0.000000e+00> : vector<8x113xf32>
    %12 = tpu.matmul %10, %11, %cst_9 {dimension_numbers = #tpu.dot_dimension_numbers<[1], [0], [0], [1], [0, 0, 1, 1], [], []>} : vector<8x8xf32>, vector<8x113xf32>, vector<8x113xf32> -> vector<8x113xf32>
    %c0_10 = arith.constant 0 : index
    %c0_11 = arith.constant 0 : index
    %13 = vector.load %arg5[%c0_10, %c0_11] : memref<1x113xf32, #tpu.memory_space<vmem>>, vector<1x113xf32>
    %14 = vector.broadcast %13 : vector<1x113xf32> to vector<8x113xf32>
    %15 = arith.addf %12, %14 : vector<8x113xf32>
    %c0_12 = arith.constant 0 : index
    %c0_13 = arith.constant 0 : index
    %16 = vector.load %arg6[%c0_12, %c0_13] : memref<8x113xf32, #tpu.memory_space<vmem>>, vector<8x113xf32>
    tpu.vector_store %arg6[%c0_12, %c0_13], %15 {strides = array<i32>} : memref<8x113xf32, #tpu.memory_space<vmem>>, vector<8x113xf32>,
    return
  }
  func.func @transform_0(%arg0: i32) -> (i32, i32) {
    %c0_i32 = arith.constant 0 : i32
    %c0_i32_0 = arith.constant 0 : i32
    return %arg0, %c0_i32 : i32, i32
  }
  func.func @transform_1(%arg0: i32) -> (i32, i32) {
    %c0_i32 = arith.constant 0 : i32
    %c0_i32_0 = arith.constant 0 : i32
    %c0_i32_1 = arith.constant 0 : i32
    return %c0_i32, %c0_i32_0 : i32, i32
  }
  func.func @transform_2(%arg0: i32) -> (i32, i32) {
    %c0_i32 = arith.constant 0 : i32
    %c0_i32_0 = arith.constant 0 : i32
    %c0_i32_1 = arith.constant 0 : i32
    return %c0_i32, %c0_i32_0 : i32, i32
  }
  func.func @transform_3(%arg0: i32) -> (i32, i32) {
    %c0_i32 = arith.constant 0 : i32
    %c0_i32_0 = arith.constant 0 : i32
    %c0_i32_1 = arith.constant 0 : i32
    return %c0_i32, %c0_i32_0 : i32, i32
  }
  func.func @transform_4(%arg0: i32) -> (i32, i32) {
    %c0_i32 = arith.constant 0 : i32
    %c0_i32_0 = arith.constant 0 : i32
    %c0_i32_1 = arith.constant 0 : i32
    return %c0_i32, %c0_i32_0 : i32, i32
  }
  func.func @transform_5(%arg0: i32) -> (i32, i32) {
    %c0_i32 = arith.constant 0 : i32
    %c0_i32_0 = arith.constant 0 : i32
    return %arg0, %c0_i32 : i32, i32
  }
}

</mosaic_0001>

<bundles_post_ra>
// kernel: encoder_forward.1
= control target key start
LH: loop header
LB: loop body
LE: loop exit
PB: predicated region body
PF: predicated region fallthrough
CT: control target
= control target key end

     0   :  { %v332_v3 = vmov 0.0|0.0   ;;  %v333_v6 = vmov 0.0   ;;  %vm334_vm0 = vmmov 0   ;;  %s437_s0 = inlined_call_operand.vmem [shape: f32[8,113], index: 0, kind: input, shape index: {}]   ;;  %s438_s1 = inlined_call_operand.vmem [shape: f32[113,8], index: 1, kind: input, shape index: {}]   ;;  %s439_s2 = inlined_call_operand.vmem [shape: f32[1,8], index: 2, kind: input, shape index: {}]   ;;  %s440_s3 = inlined_call_operand.vmem [shape: f32[8,113], index: 3, kind: input, shape index: {}]   ;;  %s441_s4 = inlined_call_operand.vmem [shape: f32[1,113], index: 4, kind: input, shape index: {}]   ;;  %s442_s5 = inlined_call_operand.hbm [shape: f32[8,113], index: 5, kind: output, shape index: {}]  }
   0x1   :  { %v22_v0 = vld [vmem:[%s438_s1] sm:$0xff]  ;;  %v23_v1 = vld [vmem:[%s438_s1 + $0x8] sm:$0xff]  ;;  %v24_v2 = vld [vmem:[%s438_s1 + $0x10] sm:$0xff]  ;;  %283 = vmatprep.subr.bf16.mxu0 %v332_v3  ;;  %278 = vmatprep.subr.mxu1 %v333_v6 }
   0x2   :  { %v284_v4 = vpack.c.bf16 %v23_v1, %v22_v0  ;;  %v25_v5 = vld [vmem:[%s438_s1 + $0x18] sm:$0xff]  ;;  %275 = vmatprep.mubr.msk.f32.mxu0 %vm334_vm0, %v333_v6  ;;  %280 = vmatprep.mubr.msk.f32.mxu1 %vm334_vm0, %v333_v6  ;;  %v26_v8 = vld [vmem:[%s438_s1 + $0x20] sm:$0xff]  ;;  %v27_v9 = vld [vmem:[%s438_s1 + $0x28] sm:$0xff] }
   0x3   :  { %v287_v7 = vpack.c.bf16 %v25_v5, %v24_v2 }
   0x4   :  { %285 = vmatpush3.bf16.msra.mxu0 %v284_v4 }
   0x5   :  { %286 = vmatprep.subr.bf16.mxu0 %v332_v3 }
   0x6   :  { %10 = vsyncpa [#allocation3], 0  ;;  %v290_v10 = vpack.c.bf16 %v27_v9, %v26_v8  ;;  %v28_v11 = vld [vmem:[%s438_s1 + $0x30] sm:$0xff]  ;;  %v29_v12 = vld [vmem:[%s438_s1 + $0x38] sm:$0xff]  ;;  %vm48_vm1 = vcmask 1040384   ;;  %vm44_vm2 = vcmask 924672  }
   0x7   :  { %v293_v13 = vpack.c.bf16 %v29_v12, %v28_v11  ;;  %v30_v14 = vld [vmem:[%s438_s1 + $0x40] sm:$0xff]  ;;  %v31_v15 = vld [vmem:[%s438_s1 + $0x48] sm:$0xff]  ;;  %v32_v17 = vld [vmem:[%s438_s1 + $0x50] sm:$0xff]  ;;  %vm133_vm4 = vcmask 64512   ;;  %s335_s29 = smov [#allocation2]  }
   0x8   :  { %288 = vmatpush3.bf16.msra.mxu0 %v287_v7  ;;  %v296_v16 = vpack.c.bf16 %v31_v15, %v30_v14  ;;  %v33_v18 = vld [vmem:[%s438_s1 + $0x58] sm:$0xff]  ;;  %v34_v20 = vld [vmem:[%s438_s1 + $0x60] sm:$0xff]  ;;  %v35_v21 = vld [vmem:[%s438_s1 + $0x68] sm:$0xff]  ;;  %s214_s30 = sshll.u32 %s335_s29, 4  ;;  %s215_s30 = int_to_ptr.vmem [resolvable:$true] %s214_s30 }
   0x9   :  { %289 = vmatprep.subr.bf16.mxu0 %v332_v3  ;;  %v299_v19 = vpack.c.bf16 %v33_v18, %v32_v17  ;;  %v302_v22 = vpack.c.bf16 %v35_v21, %v34_v20  ;;  %v36_v23 = vld [vmem:[%s438_s1 + $0x70] sm:$0x1]  ;;  %v21_v24 = vld [vmem:[%s437_s0] sm:$0xff]  ;;  %p313_p1 = scmp.lt.s32.totalorder %s215_s30, %s215_s30 }
   0xa   :  { %v125_v25 = vld [vmem:[%s440_s3] sm:$0xff] }
   0xb   :  { %279 = vmatpush3.msra.mxu1 %v125_v25  ;;  %v222_v26 = vld [vmem:[%s439_s2] ss:$0 sm:$0xff]  ;;  %s308_s2 = scalar_lea.vmem %s215_s30, 128 }
   0xc   :  { %291 = vmatpush3.bf16.msra.mxu0 %v290_v10  ;;  %v225_v32 = vld [vmem:[%s441_s4] ss:$0 sm:$0xff]  ;;  %p309_p0 = scmp.ne.s32.totalorder %s215_s30, %s308_s2  ;;  %p314_p2 = scmp.lt.s32.totalorder %s308_s2, %s308_s2 }
   0xd   :  { %292 = vmatprep.subr.bf16.mxu0 %v332_v3 }
   0xe   :  { %p315_p3 = por %p314_p2, %p313_p1 }
  0x10   :  { %294 = vmatpush3.bf16.msra.mxu0 %v293_v13  ;;  %p316_p4 = pnand %p315_p3, %p309_p0 }
  0x11   :  { %295 = vmatprep.subr.bf16.mxu0 %v332_v3 }
  0x14   :  { %297 = vmatpush3.bf16.msra.mxu0 %v296_v16 }
  0x15   :  { %298 = vmatprep.subr.bf16.mxu0 %v332_v3 }
  0x18   :  { %300 = vmatpush3.bf16.msra.mxu0 %v299_v19 }
  0x19   :  { %301 = vmatprep.subr.bf16.mxu0 %v332_v3 }
  0x1c   :  { %303 = vmatpush3.bf16.msra.mxu0 %v302_v22 }
  0x1d   :  { %273 = vmatprep.subr.mxu0 %v333_v6 }
  0x20   :  { %274 = vmatpush3.msk.msra.mxu0 %vm48_vm1, %v36_v23 }
  0x21   :  { %276 = vmatmul.mubr.msk.f32.vlgmr.msra.gmra.mrb[0].mxu0 %vm44_vm2, %v21_v24 }
  0xf4   :  { %v118_v27 = vpop.f32.mrb[0].mxu0 }
  0xf5   :  { %v119_v28 = vadd.f32 %v222_v26, %v118_v27  ;;  %v277_v29 = vpop.f32.mrb[1].mxu0 }
  0xf7   :  { %vm122_vm3 = vcmp.gt.f32.partialorder %v119_v28, 0.0  ;;  %v123_v30 = vmul.f32 0.2, %v119_v28 }
  0xf9   :  { %v124_v31 = vsel %vm122_vm3, %v119_v28, %v123_v30 }
  0xfa   :  { %281 = vmatmul.mubr.msk.f32.vlgmr.msra.gmra.mrb[0].mxu1 %vm133_vm4, %v124_v31 }
 0x1cd   :  { %v203_v33 = vpop.f32.mrb[0].mxu1 }
 0x1ce   :  { %v204_v34 = vadd.f32 %v225_v32, %v203_v33  ;;  %v282_v35 = vpop.f32.mrb[1].mxu1 }
 0x1d0   :  { %207 = vst.msk [vmem:[#allocation2] sm:$0xff] %vm44_vm2, %v204_v34 }
 0x1d1   :  { %319 = shalt.err (!%p316_p4)
}
 0x1d2   :  { %s320_s7 = scalar_lea.hbm %s442_s5, 128 }
 0x1d3   :  { %p321_p5 = scmp.ne.s32.totalorder %s442_s5, %s320_s7  ;;  %p324_p6 = scmp.lt.u32.totalorder %s320_s7, %s442_s5 }
 0x1d5   :  { %p326_p7 = pnand %p324_p6, %p321_p5 }
 0x1d7   :  { %329 = shalt.err (!%p326_p7)
}
 0x1d8   :  { %217 = dma.vmem_to_hbm [thread:$0]  %s215_s30, 128, %s442_s5, [#allocation3]  }
 0x1d9   :  { %330 = dma.done.wait [#allocation3], 128  }
 0x1da   :  { %331 = vsyncadd [#allocation3], 4294967168 }
 0x1db   :  { %221 = vsyncpa [#allocation3], 1 }

</bundles_post_ra>
